<compile_context>
chip_gen: v5e
topology: v5e:2x2
jax: 0.10.0
libtpu: 0.0.40
codegen_flags: <defaults>
</compile_context>

<pallas_src>
import jax
import jax.numpy as jnp
from jax.experimental import pallas as pl
from jax.experimental.pallas import tpu as pltpu

FEAT_A = 2048          # modelA feature width (ResNet50-like)
FEAT_B = 512           # modelB feature width (ResNet18-like)
FEAT_TOTAL = FEAT_A + FEAT_B
NB_CLASSES = 10
DEFAULT_TM = 512       # batch tile: fits scoped-VMEM defaults on v5e/v6e/v7x


def _ensemble_head_kernel(x1_ref, x2_ref, w_ref, b_ref, o_ref):
    # ReLU in the input dtype (f32 on v5e avoids a bf16 VALU round-trip),
    # then cast to bf16 for the MXU.  relu commutes with the cast, so the
    # fusion is exact.  Accumulation stays f32 via preferred_element_type.
    x1 = jnp.maximum(x1_ref[...], 0.0).astype(jnp.bfloat16)   # (tm, 2048)
    x2 = jnp.maximum(x2_ref[...], 0.0).astype(jnp.bfloat16)   # (tm, 512)
    w_a = w_ref[:FEAT_A, :]                                   # free static views
    w_b = w_ref[FEAT_A:, :]                                   # of resident weight
    acc = jnp.dot(x1, w_a, preferred_element_type=jnp.float32)
    acc = acc + jnp.dot(x2, w_b, preferred_element_type=jnp.float32)
    o_ref[...] = (acc + b_ref[...]).astype(o_ref.dtype)


def prepare_classifier(w, b):
    """One-time prep (at parameter-load time): lane-dense bf16 weight, f32 bias.

    w: (2560, nb) f32, b: (nb,) f32 -> (w_pad (2560, nb_pad) bf16,
                                        b_pad (1, nb_pad) f32, nb)
    """
    nb = w.shape[1]
    nb_pad = 128 * pl.cdiv(nb, 128)                # lane-dense output columns
    w_pad = jnp.pad(w, ((0, 0), (0, nb_pad - nb))).astype(jnp.bfloat16)
    b_pad = jnp.pad(b, (0, nb_pad - nb)).reshape(1, nb_pad).astype(jnp.float32)
    return w_pad, b_pad, nb


def _choose_tm(batch, tm_max):
    if batch <= 8:
        return batch                    # single block equal to the full batch dim
    # Ensure >= 2 grid steps: the "parallel" batch axis then shards across
    # v7x's two TensorCores and activation double-buffering kicks in.
    half = 8 * pl.cdiv(pl.cdiv(batch, 2), 8)       # ~B/2, rounded up to 8
    return min(tm_max, half)


def ensemble_head(x1, x2, w_pad, b_pad, nb, *, tm=DEFAULT_TM):
    """x1: (B, 2048), x2: (B, 512) float; w_pad/b_pad from prepare_classifier().

    Returns (B, nb) f32 = relu(cat(x1, x2)) @ W + b.
    """
    B = x1.shape[0]
    nb_pad = w_pad.shape[1]
    tm = _choose_tm(B, tm)
    n_m = pl.cdiv(B, tm)                # partial edge block handled by Pallas

    cost = pl.CostEstimate(
        flops=2 * B * FEAT_TOTAL * nb_pad,
        transcendentals=0,
        bytes_accessed=(x1.size * x1.dtype.itemsize
                        + x2.size * x2.dtype.itemsize
                        + w_pad.size * 2
                        + b_pad.size * 4
                        + B * nb_pad * 4),
    )

    out = pl.pallas_call(
        _ensemble_head_kernel,
        out_shape=jax.ShapeDtypeStruct((B, nb_pad), jnp.float32),
        grid=(n_m,),
        in_specs=[
            pl.BlockSpec((tm, FEAT_A), lambda i: (i, 0)),          # batch-tiled
            pl.BlockSpec((tm, FEAT_B), lambda i: (i, 0)),          # batch-tiled
            pl.BlockSpec((FEAT_TOTAL, nb_pad), lambda i: (0, 0)),  # resident weight
            pl.BlockSpec((1, nb_pad), lambda i: (0, 0)),           # resident bias
        ],
        out_specs=pl.BlockSpec((tm, nb_pad), lambda i: (i, 0)),
        compiler_params=pltpu.CompilerParams(
            dimension_semantics=("parallel",)),
        cost_estimate=cost,
    )(x1, x2, w_pad, b_pad)
    return out[:, :nb]


# ----- stand-in backbones (glue; the real modelA/modelB are opaque) ----------
# TODO(synk): modelA/modelB are external ResNet-like submodules in the
# reference; stood in by global-avg-pool + linear projection in plain JAX.
def backbone_features(x_nchw, proj):
    pooled = jnp.mean(x_nchw, axis=(2, 3))          # (B, C)
    return pooled @ proj                            # (B, F), may be negative


def my_ensemble_forward(x_nchw, params):
    x1 = backbone_features(x_nchw, params["projA"])   # (B, 2048) f32
    x2 = backbone_features(x_nchw, params["projB"])   # (B, 512)  f32
    return ensemble_head(x1, x2, params["fc_w_pad"], params["fc_b_pad"],
                         params["nb_classes"])


def reference_forward(x_nchw, params):
    # Mirrors the kernel's compute precision: relu in f32, bf16 matmul
    # operands, f32 accumulation, f32 bias add.
    x1 = backbone_features(x_nchw, params["projA"])
    x2 = backbone_features(x_nchw, params["projB"])
    feats = jnp.maximum(jnp.concatenate([x1, x2], axis=1), 0.0)
    out = jnp.dot(feats.astype(jnp.bfloat16),
                  params["fc_w"].astype(jnp.bfloat16),
                  preferred_element_type=jnp.float32)
    return out + params["fc_b"]


if __name__ == "__main__":
    key = jax.random.PRNGKey(0)
    kx, ka, kb, kw, kbias = jax.random.split(key, 5)

    B, C, H, W = 2, 4, 16, 16
    x = jax.random.normal(kx, (B, C, H, W), dtype=jnp.float32)

    fc_w = jax.random.normal(kw, (FEAT_TOTAL, NB_CLASSES), dtype=jnp.float32) * 0.05
    fc_b = jax.random.normal(kbias, (NB_CLASSES,), dtype=jnp.float32) * 0.01
    # One-time parameter prep (pad + bf16 cast hoisted out of the forward path).
    fc_w_pad, fc_b_pad, nb = prepare_classifier(fc_w, fc_b)

    params = {
        "projA": jax.random.normal(ka, (C, FEAT_A), dtype=jnp.float32) * 0.5,
        "projB": jax.random.normal(kb, (C, FEAT_B), dtype=jnp.float32) * 0.5,
        "fc_w": fc_w,
        "fc_b": fc_b,
        "fc_w_pad": fc_w_pad,
        "fc_b_pad": fc_b_pad,
        "nb_classes": nb,
    }

    out = jax.block_until_ready(my_ensemble_forward(x, params))
    ref = jax.block_until_ready(reference_forward(x, params))

    assert out.shape == (B, NB_CLASSES), out.shape
    assert jnp.allclose(out, ref, atol=2e-4, rtol=1e-3), (out, ref)
    print("KERNEL_OK")
</pallas_src>

<mosaic_0001>
module attributes {stable_mosaic.version = 11 : i64} {
  func.func @_ensemble_head_kernel(%arg0: i32, %arg1: memref<2x2048xf32, #tpu.memory_space<vmem>>, %arg2: memref<2x512xf32, #tpu.memory_space<vmem>>, %arg3: memref<2560x128xbf16, #tpu.memory_space<vmem>>, %arg4: memref<1x128xf32, #tpu.memory_space<vmem>>, %arg5: memref<2x128xf32, #tpu.memory_space<vmem>>) attributes {dimension_semantics = [#tpu.dimension_semantics<parallel>], iteration_bounds = array<i64: 1>, scalar_prefetch = 0 : i64, scratch_operands = 0 : i64, tpu.core_type = #tpu.core_type<tc>, window_params = [{transform_indices = @transform_0, window_bounds = array<i64: 2, 2048>}, {transform_indices = @transform_1, window_bounds = array<i64: 2, 512>}, {pipeline_mode = #tpu.pipeline_mode<synchronous>, transform_indices = @transform_2, window_bounds = array<i64: 2560, 128>}, {pipeline_mode = #tpu.pipeline_mode<synchronous>, transform_indices = @transform_3, window_bounds = array<i64: 1, 128>}, {transform_indices = @transform_4, window_bounds = array<i64: 2, 128>}]} {
    %c0 = arith.constant 0 : index
    %c0_0 = arith.constant 0 : index
    %0 = vector.load %arg1[%c0, %c0_0] : memref<2x2048xf32, #tpu.memory_space<vmem>>, vector<2x2048xf32>
    %cst = arith.constant 0.000000e+00 : f32
    %1 = vector.broadcast %cst : f32 to vector<2x2048xf32>
    %2 = arith.maximumf %0, %1 : vector<2x2048xf32>
    %3 = arith.truncf %2 : vector<2x2048xf32> to vector<2x2048xbf16>
    %c0_1 = arith.constant 0 : index
    %c0_2 = arith.constant 0 : index
    %4 = vector.load %arg2[%c0_1, %c0_2] : memref<2x512xf32, #tpu.memory_space<vmem>>, vector<2x512xf32>
    %cst_3 = arith.constant 0.000000e+00 : f32
    %5 = vector.broadcast %cst_3 : f32 to vector<2x512xf32>
    %6 = arith.maximumf %4, %5 : vector<2x512xf32>
    %7 = arith.truncf %6 : vector<2x512xf32> to vector<2x512xbf16>
    %c0_4 = arith.constant 0 : index
    %c0_5 = arith.constant 0 : index
    %8 = vector.load %arg3[%c0_4, %c0_5] : memref<2560x128xbf16, #tpu.memory_space<vmem>>, vector<2048x128xbf16>
    %c2048 = arith.constant 2048 : index
    %c0_6 = arith.constant 0 : index
    %9 = vector.load %arg3[%c2048, %c0_6] : memref<2560x128xbf16, #tpu.memory_space<vmem>>, vector<512x128xbf16>
    %cst_7 = arith.constant dense<0.000000e+00> : vector<2x128xf32>
    %10 = tpu.matmul %3, %8, %cst_7 {dimension_numbers = #tpu.dot_dimension_numbers<[1], [0], [0], [1], [0, 0, 1, 1], [], []>} : vector<2x2048xbf16>, vector<2048x128xbf16>, vector<2x128xf32> -> vector<2x128xf32>
    %cst_8 = arith.constant dense<0.000000e+00> : vector<2x128xf32>
    %11 = tpu.matmul %7, %9, %cst_8 {dimension_numbers = #tpu.dot_dimension_numbers<[1], [0], [0], [1], [0, 0, 1, 1], [], []>} : vector<2x512xbf16>, vector<512x128xbf16>, vector<2x128xf32> -> vector<2x128xf32>
    %12 = arith.addf %10, %11 : vector<2x128xf32>
    %c0_9 = arith.constant 0 : index
    %c0_10 = arith.constant 0 : index
    %13 = vector.load %arg4[%c0_9, %c0_10] : memref<1x128xf32, #tpu.memory_space<vmem>>, vector<1x128xf32>
    %14 = vector.broadcast %13 : vector<1x128xf32> to vector<2x128xf32>
    %15 = arith.addf %12, %14 : vector<2x128xf32>
    %c0_11 = arith.constant 0 : index
    %c0_12 = arith.constant 0 : index
    %16 = vector.load %arg5[%c0_11, %c0_12] : memref<2x128xf32, #tpu.memory_space<vmem>>, vector<2x128xf32>
    tpu.vector_store %arg5[%c0_11, %c0_12], %15 {strides = array<i32>} : memref<2x128xf32, #tpu.memory_space<vmem>>, vector<2x128xf32>,
    return
  }
  func.func @transform_0(%arg0: i32) -> (i32, i32) {
    %c0_i32 = arith.constant 0 : i32
    %c0_i32_0 = arith.constant 0 : i32
    return %arg0, %c0_i32 : i32, i32
  }
  func.func @transform_1(%arg0: i32) -> (i32, i32) {
    %c0_i32 = arith.constant 0 : i32
    %c0_i32_0 = arith.constant 0 : i32
    return %arg0, %c0_i32 : i32, i32
  }
  func.func @transform_2(%arg0: i32) -> (i32, i32) {
    %c0_i32 = arith.constant 0 : i32
    %c0_i32_0 = arith.constant 0 : i32
    %c0_i32_1 = arith.constant 0 : i32
    return %c0_i32, %c0_i32_0 : i32, i32
  }
  func.func @transform_3(%arg0: i32) -> (i32, i32) {
    %c0_i32 = arith.constant 0 : i32
    %c0_i32_0 = arith.constant 0 : i32
    %c0_i32_1 = arith.constant 0 : i32
    return %c0_i32, %c0_i32_0 : i32, i32
  }
  func.func @transform_4(%arg0: i32) -> (i32, i32) {
    %c0_i32 = arith.constant 0 : i32
    %c0_i32_0 = arith.constant 0 : i32
    return %arg0, %c0_i32 : i32, i32
  }
}

</mosaic_0001>

<bundles_post_ra>
// kernel: tpu_custom_call.1
= control target key start
LH: loop header
LB: loop body
LE: loop exit
PB: predicated region body
PF: predicated region fallthrough
CT: control target
= control target key end

     0   :  { %9 = vsyncpa [#allocation3], 0  ;;  %s2709_s0 = inlined_call_operand.hbm [shape: f32[2,2048], index: 0, kind: input, shape index: {}]   ;;  %s2710_s1 = inlined_call_operand.hbm [shape: f32[2,512], index: 1, kind: input, shape index: {}]   ;;  %s2711_s2 = inlined_call_operand.hbm [shape: bf16[2560,128], index: 2, kind: input, shape index: {}]   ;;  %s2712_s3 = inlined_call_operand.vmem [shape: f32[1,128], index: 3, kind: input, shape index: {}]   ;;  %s2713_s4 = inlined_call_operand.hbm [shape: f32[2,128], index: 4, kind: output, shape index: {}]  }
   0x1   :  { %10 = vsyncpa [#allocation6], 0  ;;  %s28_s17 = sshll.u32 %s2710_s1, 4  ;;  %s29_s17 = int_to_ptr.hbm [resolvable:$true] %s28_s17 }
   0x2   :  { %11 = vsyncpa [#allocation4], 0  ;;  %s2615_s18 = smov [#allocation5]   ;;  %s17_s22 = sshll.u32 %s2709_s0, 4  ;;  %s18_s22 = int_to_ptr.hbm [resolvable:$true] %s17_s22 }
   0x3   :  { %s30_s19 = sshll.u32 %s2615_s18, 4  ;;  %s2616_s23 = smov [#allocation2]   ;;  %s31_s19 = int_to_ptr.vmem [resolvable:$true] %s30_s19 }
   0x4   :  { %33 = dma.hbm_to_vmem [thread:$0]  %s29_s17, 128, %s31_s19, [#allocation6]  }
   0x5   :  { %s19_s24 = sshll.u32 %s2616_s23, 4  ;;  %s38_s27 = sshll.u32 %s2711_s2, 4  ;;  %s20_s24 = int_to_ptr.vmem [resolvable:$true] %s19_s24  ;;  %s39_s27 = int_to_ptr.hbm [resolvable:$true] %s38_s27 }
   0x6   :  { %22 = dma.hbm_to_vmem [thread:$0]  %s18_s22, 512, %s20_s24, [#allocation3]  }
   0x7   :  { %s2617_s1 = smov [#allocation7]   ;;  %s2618_s29 = smov 64  }
   0x8   :  { %s40_s28 = sshll.u32 %s2617_s1, 4  ;;  %s2619_s30 = smov 4   ;;  %s41_s28 = int_to_ptr.vmem [resolvable:$true] %s40_s28 }
   0x9   :  { %46 = dma.hbm_to_vmem [thread:$0]  %s39_s27, 20480, %s41_s28, [#allocation6], %s2618_s29, %s2618_s29, %s2619_s30  }
   0xa   :  { %2609 = dma.done.wait [#allocation3], 512  }
   0xb   :  { %2610 = vsyncadd [#allocation3], 4294966784 }
   0xc   :  { %2611 = dma.done.wait [#allocation6], 20608  }
   0xd   :  { %2612 = vsyncadd [#allocation6], 4294946688  ;;  %v2481_v0 = vld [vmem:[#allocation7 + $0x438] sm:$0xff]  ;;  %v2480_v4 = vld [vmem:[#allocation7 + $0x430] sm:$0xff]  ;;  %s2620_s5 = smov [#allocation8]   ;;  %s1695_s9 = sshll.u32 %s2713_s4, 4  ;;  %s1696_s9 = int_to_ptr.hbm [resolvable:$true] %s1695_s9 }
   0xe   :  { %v2489_v1 = vld [vmem:[#allocation7 + $0x478] sm:$0xff]  ;;  %654 = vmatpush.bf16.msra.mxu0 %v2481_v0  ;;  %v2488_v5 = vld [vmem:[#allocation7 + $0x470] sm:$0xff]  ;;  %v2479_v8 = vld [vmem:[#allocation7 + $0x428] sm:$0xff]  ;;  %s1693_s6 = sshll.u32 %s2620_s5, 4  ;;  %s1694_s6 = int_to_ptr.vmem [resolvable:$true] %s1693_s6 }
   0xf   :  { %v2497_v2 = vld [vmem:[#allocation7 + $0x4b8] sm:$0xff]  ;;  %667 = vmatpush.bf16.msra.mxu1 %v2489_v1  ;;  %v2496_v6 = vld [vmem:[#allocation7 + $0x4b0] sm:$0xff]  ;;  %v2487_v9 = vld [vmem:[#allocation7 + $0x468] sm:$0xff] }
  0x10   :  { %v2505_v3 = vld [vmem:[#allocation7 + $0x4f8] sm:$0xff]  ;;  %680 = vmatpush.bf16.msra.mxu2 %v2497_v2  ;;  %v2504_v7 = vld [vmem:[#allocation7 + $0x4f0] sm:$0xff]  ;;  %v2495_v10 = vld [vmem:[#allocation7 + $0x4a8] sm:$0xff] }
  0x11   :  { %693 = vmatpush.bf16.msra.mxu3 %v2505_v3  ;;  %v2503_v11 = vld [vmem:[#allocation7 + $0x4e8] sm:$0xff]  ;;  %v2478_v12 = vld [vmem:[#allocation7 + $0x420] sm:$0xff]  ;;  %v2477_v16 = vld [vmem:[#allocation7 + $0x418] sm:$0xff] }
  0x12   :  { %655 = vmatpush.bf16.msra.mxu0 %v2480_v4  ;;  %v2486_v13 = vld [vmem:[#allocation7 + $0x460] sm:$0xff]  ;;  %v2485_v17 = vld [vmem:[#allocation7 + $0x458] sm:$0xff]  ;;  %v2476_v21 = vld [vmem:[#allocation7 + $0x410] sm:$0xff] }
  0x13   :  { %668 = vmatpush.bf16.msra.mxu1 %v2488_v5  ;;  %v2494_v14 = vld [vmem:[#allocation7 + $0x4a0] sm:$0xff]  ;;  %v2493_v18 = vld [vmem:[#allocation7 + $0x498] sm:$0xff]  ;;  %v2484_v22 = vld [vmem:[#allocation7 + $0x450] sm:$0xff] }
  0x14   :  { %681 = vmatpush.bf16.msra.mxu2 %v2496_v6  ;;  %v2502_v15 = vld [vmem:[#allocation7 + $0x4e0] sm:$0xff]  ;;  %v2501_v19 = vld [vmem:[#allocation7 + $0x4d8] sm:$0xff]  ;;  %v2492_v24 = vld [vmem:[#allocation7 + $0x490] sm:$0xff] }
  0x15   :  { %694 = vmatpush.bf16.msra.mxu3 %v2504_v7  ;;  %v61_v20 = vld [vmem:[#allocation2] sm:$0xff]  ;;  %v2500_v25 = vld [vmem:[#allocation7 + $0x4d0] sm:$0xff]  ;;  %v2475_v26 = vld [vmem:[#allocation7 + $0x408] sm:$0xff] }
  0x16   :  { %656 = vmatpush.bf16.msra.mxu0 %v2479_v8  ;;  %v65_v23 = vmax.f32 %v61_v20, 0.0  ;;  %v2483_v27 = vld [vmem:[#allocation7 + $0x448] sm:$0xff]  ;;  %v2474_v31 = vld [vmem:[#allocation7 + $0x400] sm:$0xff]  ;;  %v2353_v36 = vld [vmem:[#allocation7 + $0x38] sm:$0xff] }
  0x17   :  { %669 = vmatpush.bf16.msra.mxu1 %v2487_v9  ;;  %v63_v28 = vld [vmem:[#allocation2 + $0x10] sm:$0xff]  ;;  %v2482_v32 = vld [vmem:[#allocation7 + $0x440] sm:$0xff]  ;;  %v2361_v37 = vld [vmem:[#allocation7 + $0x78] sm:$0xff] }
  0x18   :  { %682 = vmatpush.bf16.msra.mxu2 %v2495_v10  ;;  %73 = vst [vmem:[#allocation1] ss:$4 sm:$0xff] %v65_v23  ;;  %v2491_v29 = vld [vmem:[#allocation7 + $0x488] sm:$0xff]  ;;  %v2490_v33 = vld [vmem:[#allocation7 + $0x480] sm:$0xff]  ;;  %v67_v34 = vmax.f32 %v63_v28, 0.0  ;;  %v2369_v42 = vld [vmem:[#allocation7 + $0xb8] sm:$0xff] }
  0x19   :  { %695 = vmatpush.bf16.msra.mxu3 %v2503_v11  ;;  %v2499_v30 = vld [vmem:[#allocation7 + $0x4c8] sm:$0xff]  ;;  %v2498_v35 = vld [vmem:[#allocation7 + $0x4c0] sm:$0xff]  ;;  %v2377_v43 = vld [vmem:[#allocation7 + $0xf8] sm:$0xff] }
  0x1a   :  { %657 = vmatpush.bf16.msra.mxu0 %v2478_v12  ;;  %v126_v44 = vld [vmem:[#allocation5] sm:$0xff]  ;;  %v2352_v45 = vld [vmem:[#allocation7 + $0x30] sm:$0xff]  ;;  %v2351_v49 = vld [vmem:[#allocation7 + $0x28] sm:$0xff] }
  0x1b   :  { %670 = vmatpush.bf16.msra.mxu1 %v2486_v13  ;;  %v2360_v46 = vld [vmem:[#allocation7 + $0x70] sm:$0xff]  ;;  %v127_v50 = vmax.f32 %v126_v44, 0.0  ;;  %v2359_v51 = vld [vmem:[#allocation7 + $0x68] sm:$0xff]  ;;  %v2350_v58 = vld [vmem:[#allocation7 + $0x20] sm:$0xff] }
  0x1c   :  { %683 = vmatpush.bf16.msra.mxu2 %v2494_v14  ;;  %v2368_v47 = vld [vmem:[#allocation7 + $0xb0] sm:$0xff]  ;;  %v2367_v52 = vld [vmem:[#allocation7 + $0xa8] sm:$0xff]  ;;  %v2358_v59 = vld [vmem:[#allocation7 + $0x60] sm:$0xff] }
  0x1d   :  { %696 = vmatpush.bf16.msra.mxu3 %v2502_v15  ;;  %v2376_v48 = vld [vmem:[#allocation7 + $0xf0] sm:$0xff]  ;;  %v2375_v53 = vld [vmem:[#allocation7 + $0xe8] sm:$0xff]  ;;  %v2366_v60 = vld [vmem:[#allocation7 + $0xa0] sm:$0xff] }
  0x1e   :  { %658 = vmatpush.bf16.msra.mxu0 %v2477_v16  ;;  %v2374_v61 = vld [vmem:[#allocation7 + $0xe0] sm:$0xff]  ;;  %v2349_v62 = vld [vmem:[#allocation7 + $0x18] sm:$0xff]  ;;  %v2348_v10 = vld [vmem:[#allocation7 + $0x10] sm:$0xff] }
  0x1f   :  { %671 = vmatpush.bf16.msra.mxu1 %v2485_v17  ;;  %v2655_v38 = vld.sshfl [vmem:[#allocation1] sm:$0xff pattern:$0x73625140]  ;;  %v2657_v39 = vld.sshfl [vmem:[#allocation1 + $0x8] sm:$0xff pattern:$0x73625140] }
  0x20   :  { %684 = vmatpush.bf16.msra.mxu2 %v2493_v18  ;;  %v2659_v40 = vld.sshfl [vmem:[#allocation1 + $0x10] sm:$0xff pattern:$0x73625140]  ;;  %v2661_v41 = vld.sshfl [vmem:[#allocation1 + $0x18] sm:$0xff pattern:$0x73625140] }
  0x21   :  { %697 = vmatpush.bf16.msra.mxu3 %v2501_v19  ;;  %84 = vst [vmem:[#allocation1] ss:$4 sm:$0xff] %v67_v34  ;;  %v2357_v63 = vld [vmem:[#allocation7 + $0x58] sm:$0xff]  ;;  %v2356_v11 = vld [vmem:[#allocation7 + $0x50] sm:$0xff]  ;;  %v62_v14 = vld [vmem:[#allocation2 + $0x8] sm:$0xff]  ;;  %v112_v34 = vpack.c.bf16 %v2659_v40, %v2659_v40 }
  0x22   :  { %659 = vmatpush.bf16.msra.mxu0 %v2476_v21  ;;  %v2365_v0 = vld [vmem:[#allocation7 + $0x98] sm:$0xff]  ;;  %v2364_v12 = vld [vmem:[#allocation7 + $0x90] sm:$0xff]  ;;  %v66_v15 = vmax.f32 %v62_v14, 0.0  ;;  %v2347_v16 = vld [vmem:[#allocation7 + $0x8] sm:$0xff] }
  0x23   :  { %672 = vmatpush.bf16.msra.mxu1 %v2484_v22  ;;  %v2373_v1 = vld [vmem:[#allocation7 + $0xd8] sm:$0xff]  ;;  %v2372_v13 = vld [vmem:[#allocation7 + $0xd0] sm:$0xff]  ;;  %v2355_v17 = vld [vmem:[#allocation7 + $0x48] sm:$0xff] }
  0x24   :  { %685 = vmatpush.bf16.msra.mxu2 %v2492_v24  ;;  %v2363_v18 = vld [vmem:[#allocation7 + $0x88] sm:$0xff]  ;;  %75 = vst [vmem:[#allocation1 + $0x20] ss:$4 sm:$0xff] %v66_v15  ;;  %v2346_v20 = vld [vmem:[#allocation7] sm:$0xff]  ;;  %v2385_v24 = vld [vmem:[#allocation7 + $0x138] sm:$0xff] }
  0x25   :  { %698 = vmatpush.bf16.msra.mxu3 %v2500_v25  ;;  %v2371_v19 = vld [vmem:[#allocation7 + $0xc8] sm:$0xff]  ;;  %v2354_v21 = vld [vmem:[#allocation7 + $0x40] sm:$0xff]  ;;  %v2393_v25 = vld [vmem:[#allocation7 + $0x178] sm:$0xff] }
  0x26   :  { %660 = vmatpush.bf16.msra.mxu0 %v2475_v26  ;;  %v2362_v22 = vld [vmem:[#allocation7 + $0x80] sm:$0xff]  ;;  %v2401_v26 = vld [vmem:[#allocation7 + $0x1b8] sm:$0xff]  ;;  %v2384_v28 = vld [vmem:[#allocation7 + $0x130] sm:$0xff] }
  0x27   :  { %673 = vmatpush.bf16.msra.mxu1 %v2483_v27  ;;  %v2370_v23 = vld [vmem:[#allocation7 + $0xc0] sm:$0xff]  ;;  %v2409_v27 = vld [vmem:[#allocation7 + $0x1f8] sm:$0xff]  ;;  %v2391_v40 = vld [vmem:[#allocation7 + $0x168] sm:$0xff] }
  0x28   :  { %686 = vmatpush.bf16.msra.mxu2 %v2491_v29  ;;  %v2663_v54 = vld.sshfl [vmem:[#allocation1] sm:$0xff pattern:$0x73625140]  ;;  %v2665_v55 = vld.sshfl [vmem:[#allocation1 + $0x8] sm:$0xff pattern:$0x73625140] }
  0x29   :  { %699 = vmatpush.bf16.msra.mxu3 %v2499_v30  ;;  %v2667_v56 = vld.sshfl [vmem:[#allocation1 + $0x10] sm:$0xff pattern:$0x73625140]  ;;  %v2669_v57 = vld.sshfl [vmem:[#allocation1 + $0x18] sm:$0xff pattern:$0x73625140] }
  0x2a   :  { %661 = vmatpush.bf16.msra.mxu0 %v2474_v31  ;;  %129 = vst [vmem:[#allocation1] ss:$4 sm:$0xff] %v127_v50  ;;  %v2392_v29 = vld [vmem:[#allocation7 + $0x170] sm:$0xff]  ;;  %v2381_v50 = vld [vmem:[#allocation7 + $0x118] sm:$0xff] }
  0x2b   :  { %674 = vmatpush.bf16.msra.mxu1 %v2482_v32  ;;  %v2400_v30 = vld [vmem:[#allocation7 + $0x1b0] sm:$0xff]  ;;  %v2683_v44 = vld.sshfl [vmem:[#allocation1 + $0x28] sm:$0xff pattern:$0x73625140] }
  0x2c   :  { %687 = vmatpush.bf16.msra.mxu2 %v2490_v33  ;;  %v2408_v31 = vld [vmem:[#allocation7 + $0x1f0] sm:$0xff] }
  0x2d   :  { %700 = vmatpush.bf16.msra.mxu3 %v2498_v35  ;;  %v2671_v32 = vld.sshfl [vmem:[#allocation1 + $0x20] sm:$0xff pattern:$0x73625140]  ;;  %v110_v35 = vpack.c.bf16 %v2655_v38, %v2655_v38  ;;  %v2399_v38 = vld [vmem:[#allocation7 + $0x1a8] sm:$0xff] }
  0x2e   :  { %1474 = vmatpush.bf16.msrb.mxu0 %v2353_v36  ;;  %v64_v33 = vld [vmem:[#allocation2 + $0x18] sm:$0xff]  ;;  %v2677_v36 = vld.sshfl [vmem:[#allocation1 + $0x30] sm:$0xff pattern:$0x73625140] }
  0x2f   :  { %1487 = vmatpush.bf16.msrb.mxu1 %v2361_v37  ;;  %v68_v37 = vmax.f32 %v64_v33, 0.0  ;;  %v2416_v14 = vld [vmem:[#allocation7 + $0x230] sm:$0xff] }
  0x30   :  { %1500 = vmatpush.bf16.msrb.mxu2 %v2369_v42  ;;  %v113_v42 = vpack.c.bf16 %v2661_v41, %v2661_v41  ;;  %v2390_v41 = vld [vmem:[#allocation7 + $0x160] sm:$0xff]  ;;  %v2424_v15 = vld [vmem:[#allocation7 + $0x270] sm:$0xff] }
  0x31   :  { %1513 = vmatpush.bf16.msrb.mxu3 %v2377_v43  ;;  %v132_v2 = vld.sshfl [vmem:[#allocation1 + $0x10] sm:$0xff pattern:$0x73625140]  ;;  %v130_v3 = vld.sshfl [vmem:[#allocation1] sm:$0xff pattern:$0x73625140]  ;;  %v111_v43 = vpack.c.bf16 %v2657_v39, %v2657_v39 }
  0x32   :  { %1475 = vmatpush.bf16.msrb.mxu0 %v2352_v45  ;;  %v140_v4 = vpack.c.bf16 %v132_v2, %v132_v2  ;;  %v138_v5 = vpack.c.bf16 %v130_v3, %v130_v3  ;;  %v133_v6 = vld.sshfl [vmem:[#allocation1 + $0x18] sm:$0xff pattern:$0x73625140]  ;;  %v131_v7 = vld.sshfl [vmem:[#allocation1 + $0x8] sm:$0xff pattern:$0x73625140] }
  0x33   :  { %1488 = vmatpush.bf16.msrb.mxu1 %v2360_v46  ;;  %v141_v8 = vpack.c.bf16 %v133_v6, %v133_v6  ;;  %v139_v9 = vpack.c.bf16 %v131_v7, %v131_v7  ;;  %v2685_v45 = vld.sshfl [vmem:[#allocation1 + $0x38] sm:$0xff pattern:$0x73625140]  ;;  %v2382_v39 = vld [vmem:[#allocation7 + $0x120] sm:$0xff]  ;;  %v2417_v6 = vld [vmem:[#allocation7 + $0x238] sm:$0xff] }
  0x34   :  { %1501 = vmatpush.bf16.msrb.mxu2 %v2368_v47  ;;  %662 = vmatmul.bf16.vlgmr.msra.gmra.mxu0 %v138_v5  ;;  %v2383_v46 = vld [vmem:[#allocation7 + $0x128] sm:$0xff]  ;;  %85 = vst [vmem:[#allocation1 + $0x20] ss:$4 sm:$0xff] %v68_v37  ;;  %v2378_v2 = vld [vmem:[#allocation7 + $0x100] sm:$0xff]  ;;  %v2425_v7 = vld [vmem:[#allocation7 + $0x278] sm:$0xff] }
  0x35   :  { %1514 = vmatpush.bf16.msrb.mxu3 %v2376_v48  ;;  %688 = vmatmul.bf16.vlgmr.msra.gmra.mxu2 %v140_v4  ;;  %v2407_v47 = vld [vmem:[#allocation7 + $0x1e8] sm:$0xff]  ;;  %v2398_v48 = vld [vmem:[#allocation7 + $0x1a0] sm:$0xff]  ;;  %v2436_v33 = vld [vmem:[#allocation7 + $0x2d0] sm:$0xff] }
  0x36   :  { %1476 = vmatpush.bf16.msrb.mxu0 %v2351_v49  ;;  %701 = vmatmul.bf16.vlgmr.msra.gmra.mxu3 %v141_v8  ;;  %v2406_v49 = vld [vmem:[#allocation7 + $0x1e0] sm:$0xff]  ;;  %v2433_v8 = vld [vmem:[#allocation7 + $0x2b8] sm:$0xff]  ;;  %v2435_v37 = vld [vmem:[#allocation7 + $0x2c8] sm:$0xff] }
  0x37   :  { %1489 = vmatpush.bf16.msrb.mxu1 %v2359_v51  ;;  %v2389_v51 = vld [vmem:[#allocation7 + $0x158] sm:$0xff]  ;;  %v2386_v3 = vld [vmem:[#allocation7 + $0x140] sm:$0xff] }
  0x38   :  { %1502 = vmatpush.bf16.msrb.mxu2 %v2367_v52  ;;  %675 = vmatmul.bf16.vlgmr.msra.gmra.mxu1 %v139_v9  ;;  %v2397_v52 = vld [vmem:[#allocation7 + $0x198] sm:$0xff]  ;;  %v2394_v4 = vld [vmem:[#allocation7 + $0x180] sm:$0xff] }
  0x39   :  { %1515 = vmatpush.bf16.msrb.mxu3 %v2375_v53  ;;  %v2405_v53 = vld [vmem:[#allocation7 + $0x1d8] sm:$0xff]  ;;  %v2402_v5 = vld [vmem:[#allocation7 + $0x1c0] sm:$0xff] }
  0x3a   :  { %1477 = vmatpush.bf16.msrb.mxu0 %v2350_v58  ;;  %v2380_v58 = vld [vmem:[#allocation7 + $0x110] sm:$0xff]  ;;  %v2441_v9 = vld [vmem:[#allocation7 + $0x2f8] sm:$0xff] }
  0x3b   :  { %1490 = vmatpush.bf16.msrb.mxu1 %v2358_v59  ;;  %v2388_v59 = vld [vmem:[#allocation7 + $0x150] sm:$0xff] }
  0x3c   :  { %1503 = vmatpush.bf16.msrb.mxu2 %v2366_v60  ;;  %v2396_v60 = vld [vmem:[#allocation7 + $0x190] sm:$0xff] }
  0x3d   :  { %1516 = vmatpush.bf16.msrb.mxu3 %v2374_v61  ;;  %v2404_v61 = vld [vmem:[#allocation7 + $0x1d0] sm:$0xff] }
  0x3e   :  { %1478 = vmatpush.bf16.msrb.mxu0 %v2349_v62  ;;  %v2379_v62 = vld [vmem:[#allocation7 + $0x108] sm:$0xff] }
  0x3f   :  { %1491 = vmatpush.bf16.msrb.mxu1 %v2357_v63  ;;  %v2387_v63 = vld [vmem:[#allocation7 + $0x148] sm:$0xff] }
  0x40   :  { %1504 = vmatpush.bf16.msrb.mxu2 %v2365_v0  ;;  %v2395_v0 = vld [vmem:[#allocation7 + $0x188] sm:$0xff] }
  0x41   :  { %1517 = vmatpush.bf16.msrb.mxu3 %v2373_v1  ;;  %v2403_v1 = vld [vmem:[#allocation7 + $0x1c8] sm:$0xff] }
  0x42   :  { %1479 = vmatpush.bf16.msrb.mxu0 %v2348_v10  ;;  %v114_v10 = vpack.c.bf16 %v2671_v32, %v2671_v32  ;;  %v2428_v32 = vld [vmem:[#allocation7 + $0x290] sm:$0xff] }
  0x43   :  { %1492 = vmatpush.bf16.msrb.mxu1 %v2356_v11  ;;  %v116_v11 = vpack.c.bf16 %v2677_v36, %v2677_v36  ;;  %v2427_v36 = vld [vmem:[#allocation7 + $0x288] sm:$0xff] }
  0x44   :  { %1505 = vmatpush.bf16.msrb.mxu2 %v2364_v12  ;;  %v115_v12 = vpack.c.bf16 %v2683_v44, %v2683_v44  ;;  %v2426_v44 = vld [vmem:[#allocation7 + $0x280] sm:$0xff] }
  0x45   :  { %1518 = vmatpush.bf16.msrb.mxu3 %v2372_v13  ;;  %v117_v13 = vpack.c.bf16 %v2685_v45, %v2685_v45  ;;  %v2434_v45 = vld [vmem:[#allocation7 + $0x2c0] sm:$0xff] }
  0x46   :  { %1480 = vmatpush.bf16.msrb.mxu0 %v2347_v16  ;;  %v2432_v16 = vld [vmem:[#allocation7 + $0x2b0] sm:$0xff] }
  0x47   :  { %1493 = vmatpush.bf16.msrb.mxu1 %v2355_v17  ;;  %v2440_v17 = vld [vmem:[#allocation7 + $0x2f0] sm:$0xff] }
  0x48   :  { %1506 = vmatpush.bf16.msrb.mxu2 %v2363_v18  ;;  %v2415_v18 = vld [vmem:[#allocation7 + $0x228] sm:$0xff] }
  0x49   :  { %1519 = vmatpush.bf16.msrb.mxu3 %v2371_v19  ;;  %v2423_v19 = vld [vmem:[#allocation7 + $0x268] sm:$0xff] }
  0x4a   :  { %1481 = vmatpush.bf16.msrb.mxu0 %v2346_v20  ;;  %v2431_v20 = vld [vmem:[#allocation7 + $0x2a8] sm:$0xff] }
  0x4b   :  { %1494 = vmatpush.bf16.msrb.mxu1 %v2354_v21  ;;  %v2439_v21 = vld [vmem:[#allocation7 + $0x2e8] sm:$0xff] }
  0x4c   :  { %1507 = vmatpush.bf16.msrb.mxu2 %v2362_v22  ;;  %v2414_v22 = vld [vmem:[#allocation7 + $0x220] sm:$0xff] }
  0x4d   :  { %1520 = vmatpush.bf16.msrb.mxu3 %v2370_v23  ;;  %1482 = vmatmul.bf16.vlgmr.msrb.gmra.mxu0 %v110_v35  ;;  %v2422_v23 = vld [vmem:[#allocation7 + $0x260] sm:$0xff]  ;;  %v2419_v35 = vld [vmem:[#allocation7 + $0x248] sm:$0xff] }
  0x4e   :  { %1526 = vmatpush.bf16.msra.mxu0 %v2385_v24  ;;  %1495 = vmatmul.bf16.vlgmr.msrb.gmra.mxu1 %v111_v43  ;;  %v2430_v24 = vld [vmem:[#allocation7 + $0x2a0] sm:$0xff] }
  0x4f   :  { %1539 = vmatpush.bf16.msra.mxu1 %v2393_v25  ;;  %1508 = vmatmul.bf16.vlgmr.msrb.gmra.mxu2 %v112_v34  ;;  %v2438_v25 = vld [vmem:[#allocation7 + $0x2e0] sm:$0xff]  ;;  %v2411_v34 = vld [vmem:[#allocation7 + $0x208] sm:$0xff] }
  0x50   :  { %1552 = vmatpush.bf16.msra.mxu2 %v2401_v26  ;;  %1521 = vmatmul.bf16.vlgmr.msrb.gmra.mxu3 %v113_v42  ;;  %v2413_v26 = vld [vmem:[#allocation7 + $0x218] sm:$0xff]  ;;  %v2410_v42 = vld [vmem:[#allocation7 + $0x200] sm:$0xff] }
  0x51   :  { %1565 = vmatpush.bf16.msra.mxu3 %v2409_v27  ;;  %v2421_v27 = vld [vmem:[#allocation7 + $0x258] sm:$0xff]  ;;  %v2418_v43 = vld [vmem:[#allocation7 + $0x240] sm:$0xff] }
  0x52   :  { %1527 = vmatpush.bf16.msra.mxu0 %v2384_v28  ;;  %v2429_v28 = vld [vmem:[#allocation7 + $0x298] sm:$0xff] }
  0x53   :  { %1540 = vmatpush.bf16.msra.mxu1 %v2392_v29  ;;  %v2437_v29 = vld [vmem:[#allocation7 + $0x2d8] sm:$0xff] }
  0x54   :  { %1553 = vmatpush.bf16.msra.mxu2 %v2400_v30  ;;  %v2412_v30 = vld [vmem:[#allocation7 + $0x210] sm:$0xff] }
  0x55   :  { %1566 = vmatpush.bf16.msra.mxu3 %v2408_v31  ;;  %v2420_v31 = vld [vmem:[#allocation7 + $0x250] sm:$0xff] }
  0x56   :  { %1528 = vmatpush.bf16.msra.mxu0 %v2383_v46  ;;  %v2449_v46 = vld [vmem:[#allocation7 + $0x338] sm:$0xff] }
  0x57   :  { %1541 = vmatpush.bf16.msra.mxu1 %v2391_v40  ;;  %v2457_v40 = vld [vmem:[#allocation7 + $0x378] sm:$0xff] }
  0x58   :  { %1554 = vmatpush.bf16.msra.mxu2 %v2399_v38  ;;  %v2465_v38 = vld [vmem:[#allocation7 + $0x3b8] sm:$0xff] }
  0x59   :  { %1567 = vmatpush.bf16.msra.mxu3 %v2407_v47  ;;  %v2473_v47 = vld [vmem:[#allocation7 + $0x3f8] sm:$0xff] }
  0x5a   :  { %1529 = vmatpush.bf16.msra.mxu0 %v2382_v39  ;;  %v118_v39 = vpack.c.bf16 %v2663_v54, %v2663_v54  ;;  %v2447_v54 = vld [vmem:[#allocation7 + $0x328] sm:$0xff] }
  0x5b   :  { %1542 = vmatpush.bf16.msra.mxu1 %v2390_v41  ;;  %v120_v41 = vpack.c.bf16 %v2667_v56, %v2667_v56  ;;  %v2455_v56 = vld [vmem:[#allocation7 + $0x368] sm:$0xff] }
  0x5c   :  { %1555 = vmatpush.bf16.msra.mxu2 %v2398_v48  ;;  %v119_v48 = vpack.c.bf16 %v2665_v55, %v2665_v55  ;;  %v2463_v55 = vld [vmem:[#allocation7 + $0x3a8] sm:$0xff] }
  0x5d   :  { %1568 = vmatpush.bf16.msra.mxu3 %v2406_v49  ;;  %v121_v49 = vpack.c.bf16 %v2669_v57, %v2669_v57  ;;  %v2471_v57 = vld [vmem:[#allocation7 + $0x3e8] sm:$0xff] }
  0x5e   :  { %1530 = vmatpush.bf16.msra.mxu0 %v2381_v50  ;;  %v2448_v50 = vld [vmem:[#allocation7 + $0x330] sm:$0xff] }
  0x5f   :  { %1543 = vmatpush.bf16.msra.mxu1 %v2389_v51  ;;  %v2456_v51 = vld [vmem:[#allocation7 + $0x370] sm:$0xff] }
  0x60   :  { %1556 = vmatpush.bf16.msra.mxu2 %v2397_v52  ;;  %v2464_v52 = vld [vmem:[#allocation7 + $0x3b0] sm:$0xff] }
  0x61   :  { %1569 = vmatpush.bf16.msra.mxu3 %v2405_v53  ;;  %v2472_v53 = vld [vmem:[#allocation7 + $0x3f0] sm:$0xff] }
  0x62   :  { %1531 = vmatpush.bf16.msra.mxu0 %v2380_v58  ;;  %v2446_v58 = vld [vmem:[#allocation7 + $0x320] sm:$0xff] }
  0x63   :  { %1544 = vmatpush.bf16.msra.mxu1 %v2388_v59  ;;  %v2454_v59 = vld [vmem:[#allocation7 + $0x360] sm:$0xff] }
  0x64   :  { %1557 = vmatpush.bf16.msra.mxu2 %v2396_v60  ;;  %v2462_v60 = vld [vmem:[#allocation7 + $0x3a0] sm:$0xff] }
  0x65   :  { %1570 = vmatpush.bf16.msra.mxu3 %v2404_v61  ;;  %v2470_v61 = vld [vmem:[#allocation7 + $0x3e0] sm:$0xff] }
  0x66   :  { %1532 = vmatpush.bf16.msra.mxu0 %v2379_v62  ;;  %v2445_v62 = vld [vmem:[#allocation7 + $0x318] sm:$0xff] }
  0x67   :  { %1545 = vmatpush.bf16.msra.mxu1 %v2387_v63  ;;  %v2453_v63 = vld [vmem:[#allocation7 + $0x358] sm:$0xff] }
  0x68   :  { %1558 = vmatpush.bf16.msra.mxu2 %v2395_v0  ;;  %v2461_v0 = vld [vmem:[#allocation7 + $0x398] sm:$0xff] }
  0x69   :  { %1571 = vmatpush.bf16.msra.mxu3 %v2403_v1  ;;  %v2469_v1 = vld [vmem:[#allocation7 + $0x3d8] sm:$0xff] }
  0x6a   :  { %1533 = vmatpush.bf16.msra.mxu0 %v2378_v2  ;;  %v2444_v2 = vld [vmem:[#allocation7 + $0x310] sm:$0xff] }
  0x6b   :  { %1546 = vmatpush.bf16.msra.mxu1 %v2386_v3  ;;  %v2452_v3 = vld [vmem:[#allocation7 + $0x350] sm:$0xff] }
  0x6c   :  { %1559 = vmatpush.bf16.msra.mxu2 %v2394_v4  ;;  %v2460_v4 = vld [vmem:[#allocation7 + $0x390] sm:$0xff] }
  0x6d   :  { %1572 = vmatpush.bf16.msra.mxu3 %v2402_v5  ;;  %1534 = vmatmul.bf16.vlgmr.msra.gmra.mxu0 %v114_v10  ;;  %v2468_v5 = vld [vmem:[#allocation7 + $0x3d0] sm:$0xff]  ;;  %v2442_v10 = vld [vmem:[#allocation7 + $0x300] sm:$0xff] }
  0x6e   :  { %1578 = vmatpush.bf16.msrb.mxu0 %v2417_v6  ;;  %1547 = vmatmul.bf16.vlgmr.msra.gmra.mxu1 %v115_v12  ;;  %v2443_v6 = vld [vmem:[#allocation7 + $0x308] sm:$0xff]  ;;  %v2458_v12 = vld [vmem:[#allocation7 + $0x380] sm:$0xff] }
  0x6f   :  { %1591 = vmatpush.bf16.msrb.mxu1 %v2425_v7  ;;  %1560 = vmatmul.bf16.vlgmr.msra.gmra.mxu2 %v116_v11  ;;  %v2451_v7 = vld [vmem:[#allocation7 + $0x348] sm:$0xff]  ;;  %v2450_v11 = vld [vmem:[#allocation7 + $0x340] sm:$0xff] }
  0x70   :  { %1604 = vmatpush.bf16.msrb.mxu2 %v2433_v8  ;;  %1573 = vmatmul.bf16.vlgmr.msra.gmra.mxu3 %v117_v13  ;;  %v2459_v8 = vld [vmem:[#allocation7 + $0x388] sm:$0xff]  ;;  %v2466_v13 = vld [vmem:[#allocation7 + $0x3c0] sm:$0xff] }
  0x71   :  { %1617 = vmatpush.bf16.msrb.mxu3 %v2441_v9  ;;  %v2467_v9 = vld [vmem:[#allocation7 + $0x3c8] sm:$0xff] }
  0x72   :  { %1579 = vmatpush.bf16.msrb.mxu0 %v2416_v14  ;;  %v90_v14 = vld.sshfl [vmem:[#allocation1 + $0x20] sm:$0xff pattern:$0x73625140] }
  0x73   :  { %1592 = vmatpush.bf16.msrb.mxu1 %v2424_v15  ;;  %v91_v15 = vld.sshfl [vmem:[#allocation1 + $0x28] sm:$0xff pattern:$0x73625140] }
  0x74   :  { %1605 = vmatpush.bf16.msrb.mxu2 %v2432_v16  ;;  %v92_v16 = vld.sshfl [vmem:[#allocation1 + $0x30] sm:$0xff pattern:$0x73625140] }
  0x75   :  { %1618 = vmatpush.bf16.msrb.mxu3 %v2440_v17  ;;  %v93_v17 = vld.sshfl [vmem:[#allocation1 + $0x38] sm:$0xff pattern:$0x73625140] }
  0x76   :  { %1580 = vmatpush.bf16.msrb.mxu0 %v2415_v18  ;;  %v122_v18 = vpack.c.bf16 %v90_v14, %v90_v14 }
  0x77   :  { %1593 = vmatpush.bf16.msrb.mxu1 %v2423_v19  ;;  %v123_v19 = vpack.c.bf16 %v91_v15, %v91_v15 }
  0x78   :  { %1606 = vmatpush.bf16.msrb.mxu2 %v2431_v20  ;;  %v124_v20 = vpack.c.bf16 %v92_v16, %v92_v16 }
  0x79   :  { %1619 = vmatpush.bf16.msrb.mxu3 %v2439_v21  ;;  %v125_v21 = vpack.c.bf16 %v93_v17, %v93_v17 }
  0x7a   :  { %1581 = vmatpush.bf16.msrb.mxu0 %v2414_v22 }
  0x7b   :  { %1594 = vmatpush.bf16.msrb.mxu1 %v2422_v23 }
  0x7c   :  { %1607 = vmatpush.bf16.msrb.mxu2 %v2430_v24 }
  0x7d   :  { %1620 = vmatpush.bf16.msrb.mxu3 %v2438_v25 }
  0x7e   :  { %1582 = vmatpush.bf16.msrb.mxu0 %v2413_v26 }
  0x7f   :  { %1595 = vmatpush.bf16.msrb.mxu1 %v2421_v27 }
  0x80   :  { %1608 = vmatpush.bf16.msrb.mxu2 %v2429_v28 }
  0x81   :  { %1621 = vmatpush.bf16.msrb.mxu3 %v2437_v29 }
  0x82   :  { %1583 = vmatpush.bf16.msrb.mxu0 %v2412_v30 }
  0x83   :  { %1596 = vmatpush.bf16.msrb.mxu1 %v2420_v31 }
  0x84   :  { %1609 = vmatpush.bf16.msrb.mxu2 %v2428_v32 }
  0x85   :  { %1622 = vmatpush.bf16.msrb.mxu3 %v2436_v33 }
  0x86   :  { %1584 = vmatpush.bf16.msrb.mxu0 %v2411_v34 }
  0x87   :  { %1597 = vmatpush.bf16.msrb.mxu1 %v2419_v35 }
  0x88   :  { %1610 = vmatpush.bf16.msrb.mxu2 %v2427_v36 }
  0x89   :  { %1623 = vmatpush.bf16.msrb.mxu3 %v2435_v37 }
  0x8a   :  { %1585 = vmatpush.bf16.msrb.mxu0 %v2410_v42 }
  0x8b   :  { %1598 = vmatpush.bf16.msrb.mxu1 %v2418_v43 }
  0x8c   :  { %1611 = vmatpush.bf16.msrb.mxu2 %v2426_v44 }
  0x8d   :  { %1624 = vmatpush.bf16.msrb.mxu3 %v2434_v45  ;;  %1586 = vmatmul.bf16.vlgmr.msrb.gmra.mxu0 %v118_v39 }
  0x8e   :  { %1630 = vmatpush.bf16.msra.mxu0 %v2449_v46  ;;  %1599 = vmatmul.bf16.vlgmr.msrb.gmra.mxu1 %v119_v48 }
  0x8f   :  { %1643 = vmatpush.bf16.msra.mxu1 %v2457_v40  ;;  %1612 = vmatmul.bf16.vlgmr.msrb.gmra.mxu2 %v120_v41 }
  0x90   :  { %1656 = vmatpush.bf16.msra.mxu2 %v2465_v38  ;;  %1625 = vmatmul.bf16.vlgmr.msrb.gmra.mxu3 %v121_v49 }
  0x91   :  { %1669 = vmatpush.bf16.msra.mxu3 %v2473_v47 }
  0x92   :  { %1631 = vmatpush.bf16.msra.mxu0 %v2448_v50 }
  0x93   :  { %1644 = vmatpush.bf16.msra.mxu1 %v2456_v51 }
  0x94   :  { %1657 = vmatpush.bf16.msra.mxu2 %v2464_v52 }
  0x95   :  { %1670 = vmatpush.bf16.msra.mxu3 %v2472_v53 }
  0x96   :  { %1632 = vmatpush.bf16.msra.mxu0 %v2447_v54 }
  0x97   :  { %1645 = vmatpush.bf16.msra.mxu1 %v2455_v56 }
  0x98   :  { %1658 = vmatpush.bf16.msra.mxu2 %v2463_v55 }
  0x99   :  { %1671 = vmatpush.bf16.msra.mxu3 %v2471_v57 }
  0x9a   :  { %1633 = vmatpush.bf16.msra.mxu0 %v2446_v58 }
  0x9b   :  { %1646 = vmatpush.bf16.msra.mxu1 %v2454_v59 }
  0x9c   :  { %1659 = vmatpush.bf16.msra.mxu2 %v2462_v60 }
  0x9d   :  { %1672 = vmatpush.bf16.msra.mxu3 %v2470_v61 }
  0x9e   :  { %1634 = vmatpush.bf16.msra.mxu0 %v2445_v62 }
  0x9f   :  { %1647 = vmatpush.bf16.msra.mxu1 %v2453_v63 }
  0xa0   :  { %1660 = vmatpush.bf16.msra.mxu2 %v2461_v0 }
  0xa1   :  { %1673 = vmatpush.bf16.msra.mxu3 %v2469_v1 }
  0xa2   :  { %1635 = vmatpush.bf16.msra.mxu0 %v2444_v2 }
  0xa3   :  { %1648 = vmatpush.bf16.msra.mxu1 %v2452_v3 }
  0xa4   :  { %1661 = vmatpush.bf16.msra.mxu2 %v2460_v4 }
  0xa5   :  { %1674 = vmatpush.bf16.msra.mxu3 %v2468_v5 }
  0xa6   :  { %1636 = vmatpush.bf16.msra.mxu0 %v2443_v6 }
  0xa7   :  { %1649 = vmatpush.bf16.msra.mxu1 %v2451_v7 }
  0xa8   :  { %1662 = vmatpush.bf16.msra.mxu2 %v2459_v8 }
  0xa9   :  { %1675 = vmatpush.bf16.msra.mxu3 %v2467_v9 }
  0xaa   :  { %1637 = vmatpush.bf16.msra.mxu0 %v2442_v10 }
  0xab   :  { %1650 = vmatpush.bf16.msra.mxu1 %v2450_v11 }
  0xac   :  { %1663 = vmatpush.bf16.msra.mxu2 %v2458_v12  ;;  %v2512_v12 = vld [vmem:[%s2712_s3] ss:$0 sm:$0xff] }
  0xad   :  { %1676 = vmatpush.bf16.msra.mxu3 %v2466_v13  ;;  %1638 = vmatmul.bf16.vlgmr.msra.gmra.mxu0 %v122_v18 }
  0xae   :  { %1651 = vmatmul.bf16.vlgmr.msra.gmra.mxu1 %v123_v19 }
  0xaf   :  { %1664 = vmatmul.bf16.vlgmr.msra.gmra.mxu2 %v124_v20 }
  0xb0   :  { %1677 = vmatmul.bf16.vlgmr.msra.gmra.mxu3 %v125_v21 }
  0xb1   :  { %v663_v22 = vpop.f32.mrf.mxu0 }
  0xb5   :  { %v676_v23 = vpop.f32.mrf.mxu1 }
  0xb6   :  { %v677_v24 = vadd.f32 %v676_v23, %v663_v22 }
  0xb8   :  { %v689_v25 = vpop.f32.mrf.mxu2 }
  0xb9   :  { %v690_v26 = vadd.f32 %v689_v25, %v677_v24  ;;  %v702_v27 = vpop.f32.mrf.mxu3  ;;  %v665_v28 = vpop.f32.mrf.mxu0 }
  0xbb   :  { %v703_v29 = vadd.f32 %v702_v27, %v690_v26 }
  0xbd   :  { %v678_v30 = vpop.f32.mrf.mxu1 }
  0xc0   :  { %v691_v31 = vpop.f32.mrf.mxu2 }
  0xc1   :  { %v704_v32 = vpop.f32.mrf.mxu3 }
  0xca   :  { %v1483_v33 = vpop.f32.mrf.mxu0 }
  0xcb   :  { %v1484_v34 = vadd.f32 %v1483_v33, %v703_v29  ;;  %v1496_v35 = vpop.f32.mrf.mxu1 }
  0xcd   :  { %v1497_v36 = vadd.f32 %v1496_v35, %v1484_v34 }
  0xd2   :  { %v1509_v37 = vpop.f32.mrf.mxu2  ;;  %v1485_v43 = vpop.f32.mrf.mxu0 }
  0xd3   :  { %v1522_v42 = vpop.f32.mrf.mxu3  ;;  %v1498_v44 = vpop.f32.mrf.mxu1  ;;  %v1510_v52 = vadd.f32 %v1509_v37, %v1497_v36 }
  0xd5   :  { %v1523_v54 = vadd.f32 %v1522_v42, %v1510_v52 }
  0xda   :  { %v1511_v45 = vpop.f32.mrf.mxu2 }
  0xdb   :  { %v1524_v46 = vpop.f32.mrf.mxu3 }
  0xea   :  { %v1535_v40 = vpop.f32.mrf.mxu0 }
  0xeb   :  { %v1548_v38 = vpop.f32.mrf.mxu1  ;;  %v1536_v55 = vadd.f32 %v1535_v40, %v1523_v54 }
  0xed   :  { %v1549_v60 = vadd.f32 %v1548_v38, %v1536_v55 }
  0xf2   :  { %v1561_v47 = vpop.f32.mrf.mxu2  ;;  %v1537_v41 = vpop.f32.mrf.mxu0 }
  0xf3   :  { %v1574_v39 = vpop.f32.mrf.mxu3  ;;  %v1550_v48 = vpop.f32.mrf.mxu1  ;;  %v1562_v61 = vadd.f32 %v1561_v47, %v1549_v60 }
  0xf5   :  { %v1575_v0 = vadd.f32 %v1574_v39, %v1562_v61 }
  0xfa   :  { %v1563_v49 = vpop.f32.mrf.mxu2 }
  0xfb   :  { %v1576_v50 = vpop.f32.mrf.mxu3 }
 0x10a   :  { %v1587_v51 = vpop.f32.mrf.mxu0 }
 0x10b   :  { %v1600_v53 = vpop.f32.mrf.mxu1  ;;  %v1588_v1 = vadd.f32 %v1587_v51, %v1575_v0 }
 0x10d   :  { %v1601_v2 = vadd.f32 %v1600_v53, %v1588_v1 }
 0x112   :  { %v1613_v56 = vpop.f32.mrf.mxu2  ;;  %v1589_v58 = vpop.f32.mrf.mxu0 }
 0x113   :  { %v1626_v57 = vpop.f32.mrf.mxu3  ;;  %v1602_v59 = vpop.f32.mrf.mxu1  ;;  %v1614_v3 = vadd.f32 %v1613_v56, %v1601_v2 }
 0x115   :  { %v1627_v4 = vadd.f32 %v1626_v57, %v1614_v3 }
 0x11a   :  { %v1615_v62 = vpop.f32.mrf.mxu2 }
 0x11b   :  { %v1628_v63 = vpop.f32.mrf.mxu3 }
 0x12a   :  { %v1639_v5 = vpop.f32.mrf.mxu0 }
 0x12b   :  { %v1652_v6 = vpop.f32.mrf.mxu1  ;;  %v1640_v7 = vadd.f32 %v1639_v5, %v1627_v4 }
 0x12d   :  { %v1653_v8 = vadd.f32 %v1652_v6, %v1640_v7 }
 0x132   :  { %v1665_v9 = vpop.f32.mrf.mxu2  ;;  %v1641_v13 = vpop.f32.mrf.mxu0 }
 0x133   :  { %v1678_v10 = vpop.f32.mrf.mxu3  ;;  %v1666_v11 = vadd.f32 %v1665_v9, %v1653_v8  ;;  %v1654_v14 = vpop.f32.mrf.mxu1 }
 0x135   :  { %v1679_v15 = vadd.f32 %v1678_v10, %v1666_v11 }
 0x137   :  { %v1686_v16 = vadd.f32 %v2512_v12, %v1679_v15 }
 0x139   :  { %1687 = vst [vmem:[#allocation8] sm:$0x3] %v1686_v16 }
 0x13a   :  { %v1667_v17 = vpop.f32.mrf.mxu2  ;;  %1698 = dma.vmem_to_hbm [thread:$0]  %s1694_s6, 32, %s1696_s9, [#allocation4]  }
 0x13b   :  { %v1680_v18 = vpop.f32.mrf.mxu3 }
 0x13c   :  { %2613 = dma.done.wait [#allocation4], 32  }
 0x13d   :  { %2614 = vsyncadd [#allocation4], 4294967264 }
 0x13e   :  { %1703 = vsyncpa [#allocation3], 1 }
 0x13f   :  { %1704 = vsyncpa [#allocation6], 1 }
 0x140   :  { %1705 = vsyncpa [#allocation4], 1 }

</bundles_post_ra>
